<compile_context>
chip_gen: v7x
topology: tpu7x:2x2x1
jax: 0.10.0
libtpu: 0.0.40
codegen_flags: <defaults>
</compile_context>

<pallas_src>
import functools

import jax
import jax.numpy as jnp
from jax.experimental import pallas as pl
from jax.experimental.pallas import tpu as pltpu


def _alignment_kernel(enc_ref, pe_ref, pd_ref, v_ref, lens_ref,
                      ctx_ref, m_sc, l_sc, acc_sc, *, block_l):
    """One (decoder step t, encoder L-tile l) grid point of Bahdanau attention.

    enc_ref : (B, bl, E)  bf16/f32  encoder states tile (only used on the MXU)
    pe_ref  : (B, bl, H)  f32       precomputed enc @ W_enc tile
    pd_ref  : (1, B, H)   f32       precomputed dec_t @ W_dec (this step)
    v_ref   : (1, 1, H)   f32       reducer vector
    lens_ref: (B, 1)      i32       valid lengths
    ctx_ref : (1, B, E)   f32       context output for this step
    m_sc / l_sc / acc_sc : online-softmax running max / denom / context acc
    """
    li = pl.program_id(1)
    n_l = pl.num_programs(1)

    @pl.when(li == 0)
    def _():
        m_sc[...] = jnp.full_like(m_sc, -1e30)
        l_sc[...] = jnp.zeros_like(l_sc)
        acc_sc[...] = jnp.zeros_like(acc_sc)

    # Energy for this L tile: tanh(enc_proj + dec_proj) . v   -> (B, bl), bl on lanes.
    h = jnp.tanh(pe_ref[...] + pd_ref[0][:, None, :])            # (B, bl, H) f32
    energy = jnp.sum(h * v_ref[...], axis=-1)                    # (B, bl)

    B, bl = energy.shape
    pos = li * block_l + jax.lax.broadcasted_iota(jnp.int32, (B, bl), 1)
    energy = jnp.where(pos >= lens_ref[...], jnp.float32(-1e30), energy)

    # Online-softmax update.
    m_new = jnp.maximum(m_sc[...], jnp.max(energy, axis=-1, keepdims=True))  # (B,1)
    alpha = jnp.exp(m_sc[...] - m_new)                                       # (B,1)
    p = jnp.exp(energy - m_new)                                              # (B,bl)
    l_sc[...] = alpha * l_sc[...] + jnp.sum(p, axis=-1, keepdims=True)

    # Weighted-context contribution on the MXU (batched over B, contracting bl).
    ctx_part = jnp.einsum(
        'bql,ble->bqe',
        p[:, None, :].astype(enc_ref.dtype),
        enc_ref[...],
        preferred_element_type=jnp.float32)[:, 0, :]                         # (B,E) f32
    acc_sc[...] = alpha * acc_sc[...] + ctx_part
    m_sc[...] = m_new

    @pl.when(li == n_l - 1)
    def _():
        # Exact divide on the (B,1) denominator (cheap; avoids approx-recip error).
        ctx_ref[0] = (acc_sc[...] / l_sc[...]).astype(ctx_ref.dtype)


def alignment_forward_steps(encoder_padded, encoder_lens, decoder_hiddens,
                            w_enc, w_dec, v, *, l_block=512,
                            mxu_dtype=jnp.bfloat16):
    """Batched-over-decoder-steps Pallas forward.

    Args:
      encoder_padded : (L, B, E) f32  time-major padded encoder states
      encoder_lens   : (B,)      int  valid lengths per batch element
      decoder_hiddens: (T, B, D) f32  decoder hidden state for T steps
      w_enc          : (E, H)    f32  encoder_w weight, pre-transposed to (in, out)
      w_dec          : (D, H)    f32  decoder_w weight, pre-transposed to (in, out)
      v              : (H,)      f32  _Reducer parameter
      l_block        : encoder-time tile size (flash-style online softmax)
      mxu_dtype      : dtype for the in-kernel MXU contraction (bf16 on all gens)

    Returns:
      contexts: (T, B, E) f32 — context vector for each decoder step.
    """
    L, B, E = encoder_padded.shape
    T, _, D = decoder_hiddens.shape
    H = w_enc.shape[1]

    # ---- Hoisted projections: one well-shaped matmul each, outside the kernel.
    enc_ble = jnp.transpose(encoder_padded, (1, 0, 2))                     # (B, L, E)
    pe = jnp.dot(enc_ble.reshape(B * L, E), w_enc,
                 preferred_element_type=jnp.float32,
                 precision=jax.lax.Precision.HIGHEST).reshape(B, L, H)     # cached enc proj
    pd = jnp.dot(decoder_hiddens.reshape(T * B, D), w_dec,
                 preferred_element_type=jnp.float32,
                 precision=jax.lax.Precision.HIGHEST).reshape(T, B, H)     # all dec projs

    # ---- L tiling / padding (block second-to-last dim must be %8 or full).
    if l_block >= L:
        block_l = L
    else:
        block_l = max(8, (l_block // 8) * 8)
    n_l = pl.cdiv(L, block_l)
    L_pad = n_l * block_l
    if L_pad != L:
        pad = [(0, 0), (0, L_pad - L), (0, 0)]
        enc_ble = jnp.pad(enc_ble, pad)   # padded positions masked via lens anyway
        pe = jnp.pad(pe, pad)

    enc_mxu = enc_ble.astype(mxu_dtype)   # kernel only uses enc on the MXU
    lens = encoder_lens.astype(jnp.int32).reshape(B, 1)
    v3 = v.astype(jnp.float32).reshape(1, 1, H)

    # ---- VMEM budget (double-buffered streamed blocks + tiny residents + scratch).
    it_mxu = jnp.dtype(mxu_dtype).itemsize
    blk_bytes = (2 * B * block_l * E * it_mxu      # enc tile
                 + 2 * B * block_l * H * 4         # pe tile
                 + 2 * B * H * 4                   # pd block
                 + 2 * B * E * 4                   # ctx out block
                 + H * 4 + B * 4                   # v, lens
                 + (2 * B + B * E) * 4)            # scratch accumulators
    vmem_limit = min(128 << 20, max(int(blk_bytes * 1.5) + (2 << 20), 8 << 20))

    cost = pl.CostEstimate(
        flops=T * B * L_pad * (3 * H + 2 * E + 6),
        transcendentals=T * B * L_pad * (H + 1),
        bytes_accessed=(T * B * L_pad * (E * it_mxu + 4 * H)
                        + T * B * (H + E) * 4 + B * 4 + H * 4))

    kernel = functools.partial(_alignment_kernel, block_l=block_l)

    return pl.pallas_call(
        kernel,
        out_shape=jax.ShapeDtypeStruct((T, B, E), jnp.float32),
        grid=(T, n_l),
        in_specs=[
            pl.BlockSpec((B, block_l, E), lambda t, l: (0, l, 0)),   # enc tile (MXU dtype)
            pl.BlockSpec((B, block_l, H), lambda t, l: (0, l, 0)),   # enc projection tile
            pl.BlockSpec((1, B, H), lambda t, l: (t, 0, 0)),         # dec projection (per step)
            pl.BlockSpec((1, 1, H), lambda t, l: (0, 0, 0)),         # reducer v (tiny, invariant)
            pl.BlockSpec((B, 1), lambda t, l: (0, 0)),               # lengths (tiny, invariant)
        ],
        out_specs=pl.BlockSpec((1, B, E), lambda t, l: (t, 0, 0)),
        scratch_shapes=[
            pltpu.VMEM((B, 1), jnp.float32),   # running max
            pltpu.VMEM((B, 1), jnp.float32),   # running softmax denom
            pltpu.VMEM((B, E), jnp.float32),   # running context accumulator
        ],
        compiler_params=pltpu.CompilerParams(
            # T steps are now fully independent -> parallel (v7x megacore split);
            # L is the online-softmax reduction -> arbitrary (sequential).
            dimension_semantics=("parallel", "arbitrary"),
            vmem_limit_bytes=vmem_limit),
        cost_estimate=cost,
    )(enc_mxu, pe, pd, v3, lens)


def alignment_forward(encoder_padded, encoder_lens, last_decoder_hidden,
                      w_enc, w_dec, v, **kwargs):
    """Single-step forward matching the PyTorch module's `forward` signature."""
    ctx = alignment_forward_steps(encoder_padded, encoder_lens,
                                  last_decoder_hidden[None], w_enc, w_dec, v,
                                  **kwargs)
    return ctx[0]


def _reference_step(encoder_padded, encoder_lens, dec_h, w_enc, w_dec, v):
    """Pure-JAX reference mirroring the PyTorch semantics (one decoder step)."""
    L, B, _ = encoder_padded.shape
    hi = jax.lax.Precision.HIGHEST
    proj_e = jnp.einsum('lbe,eh->lbh', encoder_padded, w_enc, precision=hi)   # (L, B, H)
    proj_d = jnp.dot(dec_h, w_dec, precision=hi)                              # (B, H)
    energy = jnp.einsum('lbh,h->lb', jnp.tanh(proj_e + proj_d[None]), v,
                        precision=hi)                                         # (L, B)
    pos = jnp.arange(L)[:, None]
    energy = jnp.where(pos >= encoder_lens[None, :], -jnp.inf, energy)
    scores = jax.nn.softmax(energy, axis=0)
    return jnp.sum(scores[..., None] * encoder_padded, axis=0)


if __name__ == "__main__":
    # Small shapes consistent with the Alignment module; L chosen so the
    # online-softmax path sees multiple L tiles plus a padded remainder.
    L, B = 20, 8             # padded seq length, batch
    E, D, H = 32, 32, 32     # encoder_size, decoder_size, hidden_size
    T = 4                    # decoder steps batched into one pallas_call

    key = jax.random.PRNGKey(0)
    k1, k2, k3, k4, k5 = jax.random.split(key, 5)

    encoder_padded = jax.random.normal(k1, (L, B, E), dtype=jnp.float32)
    decoder_hiddens = jax.random.normal(k2, (T, B, D), dtype=jnp.float32)

    # Deterministic synthetic parameters (weights pre-transposed to (in, out)).
    w_enc = jax.random.normal(k3, (E, H), dtype=jnp.float32) * 0.1   # encoder_w
    w_dec = jax.random.normal(k4, (D, H), dtype=jnp.float32) * 0.1   # decoder_w
    v = jax.random.uniform(k5, (H,), dtype=jnp.float32)              # _Reducer.v

    # Per-sequence valid lengths (pre-padding), mimicking PackedSequence lens.
    encoder_lens = jnp.array([20, 5, 9, 17, 1, 12, 7, 3], dtype=jnp.int32)

    # Zero padded encoder positions like pad_packed_sequence would.
    valid = (jnp.arange(L)[:, None] < encoder_lens[None, :])[..., None]
    encoder_padded = jnp.where(valid, encoder_padded, 0.0)

    # Multi-step kernel call; l_block=8 -> 3 L tiles (incl. padded remainder),
    # exercising the online softmax, masking and padding paths.
    ctx_steps = alignment_forward_steps(encoder_padded, encoder_lens,
                                        decoder_hiddens, w_enc, w_dec, v,
                                        l_block=8)
    jax.block_until_ready(ctx_steps)
    assert ctx_steps.shape == (T, B, E)

    ref_steps = jnp.stack([
        _reference_step(encoder_padded, encoder_lens, decoder_hiddens[t],
                        w_enc, w_dec, v)
        for t in range(T)
    ])
    # bf16 MXU operands (with f32 accumulation) -> a few e-3 absolute error.
    max_err = float(jnp.max(jnp.abs(ctx_steps - ref_steps)))
    assert jnp.allclose(ctx_steps, ref_steps, atol=2e-2, rtol=2e-2), max_err

    # Single-step path (original module forward signature).
    ctx_single = alignment_forward(encoder_padded, encoder_lens,
                                   decoder_hiddens[0], w_enc, w_dec, v,
                                   l_block=8)
    jax.block_until_ready(ctx_single)
    assert ctx_single.shape == (B, E)
    assert jnp.allclose(ctx_single, ref_steps[0], atol=2e-2, rtol=2e-2)

    print("KERNEL_OK")
</pallas_src>

<mosaic_0001>
module attributes {stable_mosaic.version = 11 : i64} {
  func.func @_alignment_kernel(%arg0: i32, %arg1: i32, %arg2: memref<8x8x32xbf16, #tpu.memory_space<vmem>>, %arg3: memref<8x8x32xf32, #tpu.memory_space<vmem>>, %arg4: memref<1x8x32xf32, #tpu.memory_space<vmem>>, %arg5: memref<1x1x32xf32, #tpu.memory_space<vmem>>, %arg6: memref<8x1xi32, #tpu.memory_space<vmem>>, %arg7: memref<1x8x32xf32, #tpu.memory_space<vmem>>, %arg8: memref<8x1xf32, #tpu.memory_space<vmem>>, %arg9: memref<8x1xf32, #tpu.memory_space<vmem>>, %arg10: memref<8x32xf32, #tpu.memory_space<vmem>>) attributes {dimension_semantics = [#tpu.dimension_semantics<parallel>, #tpu.dimension_semantics<arbitrary>], iteration_bounds = array<i64: 4, 3>, scalar_prefetch = 0 : i64, scratch_operands = 3 : i64, tpu.core_type = #tpu.core_type<tc>, window_params = [{transform_indices = @transform_0, window_bounds = array<i64: 8, 8, 32>}, {transform_indices = @transform_1, window_bounds = array<i64: 8, 8, 32>}, {transform_indices = @transform_2, window_bounds = array<i64: 1, 8, 32>}, {pipeline_mode = #tpu.pipeline_mode<synchronous>, transform_indices = @transform_3, window_bounds = array<i64: 1, 1, 32>}, {pipeline_mode = #tpu.pipeline_mode<synchronous>, transform_indices = @transform_4, window_bounds = array<i64: 8, 1>}, {transform_indices = @transform_5, window_bounds = array<i64: 1, 8, 32>}]} {
    %c0_i32 = arith.constant 0 : i32
    %0 = arith.cmpi eq, %arg1, %c0_i32 : i32
    %1 = arith.extui %0 : i1 to i32
    %c0_i32_0 = arith.constant 0 : i32
    %2 = arith.cmpi ne, %1, %c0_i32_0 : i32
    scf.if %2 {
      %cst_33 = arith.constant -1.000000e+30 : f32
      %53 = vector.broadcast %cst_33 : f32 to vector<8x1xf32>
      %c0_34 = arith.constant 0 : index
      %c0_35 = arith.constant 0 : index
      %54 = vector.load %arg8[%c0_34, %c0_35] : memref<8x1xf32, #tpu.memory_space<vmem>>, vector<8x1xf32>
      tpu.vector_store %arg8[%c0_34, %c0_35], %53 {strides = array<i32>} : memref<8x1xf32, #tpu.memory_space<vmem>>, vector<8x1xf32>,
      %cst_36 = arith.constant 0.000000e+00 : f32
      %55 = vector.broadcast %cst_36 : f32 to vector<8x1xf32>
      %c0_37 = arith.constant 0 : index
      %c0_38 = arith.constant 0 : index
      %56 = vector.load %arg9[%c0_37, %c0_38] : memref<8x1xf32, #tpu.memory_space<vmem>>, vector<8x1xf32>
      tpu.vector_store %arg9[%c0_37, %c0_38], %55 {strides = array<i32>} : memref<8x1xf32, #tpu.memory_space<vmem>>, vector<8x1xf32>,
      %cst_39 = arith.constant 0.000000e+00 : f32
      %57 = vector.broadcast %cst_39 : f32 to vector<8x32xf32>
      %c0_40 = arith.constant 0 : index
      %c0_41 = arith.constant 0 : index
      %58 = vector.load %arg10[%c0_40, %c0_41] : memref<8x32xf32, #tpu.memory_space<vmem>>, vector<8x32xf32>
      tpu.vector_store %arg10[%c0_40, %c0_41], %57 {strides = array<i32>} : memref<8x32xf32, #tpu.memory_space<vmem>>, vector<8x32xf32>,
    } else {
    }
    %c0 = arith.constant 0 : index
    %c0_1 = arith.constant 0 : index
    %c0_2 = arith.constant 0 : index
    %3 = vector.load %arg3[%c0, %c0_1, %c0_2] : memref<8x8x32xf32, #tpu.memory_space<vmem>>, vector<8x8x32xf32>
    %c0_3 = arith.constant 0 : index
    %c0_4 = arith.constant 0 : index
    %c0_5 = arith.constant 0 : index
    %4 = vector.load %arg4[%c0_3, %c0_4, %c0_5] : memref<1x8x32xf32, #tpu.memory_space<vmem>>, vector<1x8x32xf32>
    %5 = vector.shape_cast %4 : vector<1x8x32xf32> to vector<8x32xf32>
    %6 = vector.shape_cast %5 : vector<8x32xf32> to vector<8x1x32xf32>
    %7 = vector.broadcast %6 : vector<8x1x32xf32> to vector<8x8x32xf32>
    %8 = arith.addf %3, %7 : vector<8x8x32xf32>
    %9 = math.tanh %8 : vector<8x8x32xf32>
    %c0_6 = arith.constant 0 : index
    %c0_7 = arith.constant 0 : index
    %c0_8 = arith.constant 0 : index
    %10 = vector.load %arg5[%c0_6, %c0_7, %c0_8] : memref<1x1x32xf32, #tpu.memory_space<vmem>>, vector<1x1x32xf32>
    %11 = vector.broadcast %10 : vector<1x1x32xf32> to vector<8x8x32xf32>
    %12 = arith.mulf %9, %11 : vector<8x8x32xf32>
    %cst = arith.constant dense<0.000000e+00> : vector<8x8xf32>
    %13 = vector.multi_reduction <add>, %12, %cst [2] : vector<8x8x32xf32> to vector<8x8xf32>
    %c8_i32 = arith.constant 8 : i32
    %14 = arith.muli %arg1, %c8_i32 : i32
    %15 = tpu.iota {dimensions = array<i32: 1>} : vector<8x8xi32>
    %16 = vector.broadcast %14 : i32 to vector<8x8xi32>
    %17 = arith.addi %16, %15 : vector<8x8xi32>
    %c0_9 = arith.constant 0 : index
    %c0_10 = arith.constant 0 : index
    %18 = vector.load %arg6[%c0_9, %c0_10] : memref<8x1xi32, #tpu.memory_space<vmem>>, vector<8x1xi32>
    %19 = vector.broadcast %18 : vector<8x1xi32> to vector<8x8xi32>
    %20 = arith.cmpi sge, %17, %19 : vector<8x8xi32>
    %cst_11 = arith.constant -1.000000e+30 : f32
    %21 = vector.broadcast %cst_11 : f32 to vector<8x8xf32>
    %22 = arith.select %20, %21, %13 : vector<8x8xi1>, vector<8x8xf32>
    %c0_12 = arith.constant 0 : index
    %c0_13 = arith.constant 0 : index
    %23 = vector.load %arg8[%c0_12, %c0_13] : memref<8x1xf32, #tpu.memory_space<vmem>>, vector<8x1xf32>
    %cst_14 = arith.constant dense<0xFF800000> : vector<8xf32>
    %24 = vector.multi_reduction <maximumf>, %22, %cst_14 [1] : vector<8x8xf32> to vector<8xf32>
    %25 = vector.shape_cast %24 : vector<8xf32> to vector<8x1xf32>
    %26 = arith.maximumf %23, %25 : vector<8x1xf32>
    %c0_15 = arith.constant 0 : index
    %c0_16 = arith.constant 0 : index
    %27 = vector.load %arg8[%c0_15, %c0_16] : memref<8x1xf32, #tpu.memory_space<vmem>>, vector<8x1xf32>
    %28 = arith.subf %27, %26 : vector<8x1xf32>
    %29 = math.exp %28 : vector<8x1xf32>
    %30 = vector.broadcast %26 : vector<8x1xf32> to vector<8x8xf32>
    %31 = arith.subf %22, %30 : vector<8x8xf32>
    %32 = math.exp %31 : vector<8x8xf32>
    %c0_17 = arith.constant 0 : index
    %c0_18 = arith.constant 0 : index
    %33 = vector.load %arg9[%c0_17, %c0_18] : memref<8x1xf32, #tpu.memory_space<vmem>>, vector<8x1xf32>
    %34 = arith.mulf %29, %33 : vector<8x1xf32>
    %cst_19 = arith.constant dense<0.000000e+00> : vector<8xf32>
    %35 = vector.multi_reduction <add>, %32, %cst_19 [1] : vector<8x8xf32> to vector<8xf32>
    %36 = vector.shape_cast %35 : vector<8xf32> to vector<8x1xf32>
    %37 = arith.addf %34, %36 : vector<8x1xf32>
    %c0_20 = arith.constant 0 : index
    %c0_21 = arith.constant 0 : index
    %38 = vector.load %arg9[%c0_20, %c0_21] : memref<8x1xf32, #tpu.memory_space<vmem>>, vector<8x1xf32>
    tpu.vector_store %arg9[%c0_20, %c0_21], %37 {strides = array<i32>} : memref<8x1xf32, #tpu.memory_space<vmem>>, vector<8x1xf32>,
    %39 = vector.shape_cast %32 : vector<8x8xf32> to vector<8x1x8xf32>
    %40 = arith.truncf %39 : vector<8x1x8xf32> to vector<8x1x8xbf16>
    %c0_22 = arith.constant 0 : index
    %c0_23 = arith.constant 0 : index
    %c0_24 = arith.constant 0 : index
    %41 = vector.load %arg2[%c0_22, %c0_23, %c0_24] : memref<8x8x32xbf16, #tpu.memory_space<vmem>>, vector<8x8x32xbf16>
    "tpu.trace_start"() <{level = 10 : i32, message = "bql,ble->bqe"}> : () -> ()
    %cst_25 = arith.constant dense<0.000000e+00> : vector<8x1x32xf32>
    %42 = tpu.matmul %40, %41, %cst_25 {dimension_numbers = #tpu.dot_dimension_numbers<[2], [1], [1], [2], [0, 0, 0, 1, 1, 2], [0], [0]>} : vector<8x1x8xbf16>, vector<8x8x32xbf16>, vector<8x1x32xf32> -> vector<8x1x32xf32>
    "tpu.trace_stop"() : () -> ()
    %43 = vector.shape_cast %42 : vector<8x1x32xf32> to vector<8x32xf32>
    %c0_26 = arith.constant 0 : index
    %c0_27 = arith.constant 0 : index
    %44 = vector.load %arg10[%c0_26, %c0_27] : memref<8x32xf32, #tpu.memory_space<vmem>>, vector<8x32xf32>
    %45 = vector.broadcast %29 : vector<8x1xf32> to vector<8x32xf32>
    %46 = arith.mulf %45, %44 : vector<8x32xf32>
    %47 = arith.addf %46, %43 : vector<8x32xf32>
    %c0_28 = arith.constant 0 : index
    %c0_29 = arith.constant 0 : index
    %48 = vector.load %arg10[%c0_28, %c0_29] : memref<8x32xf32, #tpu.memory_space<vmem>>, vector<8x32xf32>
    tpu.vector_store %arg10[%c0_28, %c0_29], %47 {strides = array<i32>} : memref<8x32xf32, #tpu.memory_space<vmem>>, vector<8x32xf32>,
    %c0_30 = arith.constant 0 : index
    %c0_31 = arith.constant 0 : index
    %49 = vector.load %arg8[%c0_30, %c0_31] : memref<8x1xf32, #tpu.memory_space<vmem>>, vector<8x1xf32>
    tpu.vector_store %arg8[%c0_30, %c0_31], %26 {strides = array<i32>} : memref<8x1xf32, #tpu.memory_space<vmem>>, vector<8x1xf32>,
    %c2_i32 = arith.constant 2 : i32
    %50 = arith.cmpi eq, %arg1, %c2_i32 : i32
    %51 = arith.extui %50 : i1 to i32
    %c0_i32_32 = arith.constant 0 : i32
    %52 = arith.cmpi ne, %51, %c0_i32_32 : i32
    scf.if %52 {
      %c0_33 = arith.constant 0 : index
      %c0_34 = arith.constant 0 : index
      %53 = vector.load %arg10[%c0_33, %c0_34] : memref<8x32xf32, #tpu.memory_space<vmem>>, vector<8x32xf32>
      %c0_35 = arith.constant 0 : index
      %c0_36 = arith.constant 0 : index
      %54 = vector.load %arg9[%c0_35, %c0_36] : memref<8x1xf32, #tpu.memory_space<vmem>>, vector<8x1xf32>
      %55 = vector.broadcast %54 : vector<8x1xf32> to vector<8x32xf32>
      %56 = arith.divf %53, %55 : vector<8x32xf32>
      %c0_37 = arith.constant 0 : index
      %c0_38 = arith.constant 0 : index
      %c0_39 = arith.constant 0 : index
      %57 = vector.load %arg7[%c0_37, %c0_38, %c0_39] : memref<1x8x32xf32, #tpu.memory_space<vmem>>, vector<1x8x32xf32>
      %58 = vector.shape_cast %57 : vector<1x8x32xf32> to vector<8x32xf32>
      %59 = vector.shape_cast %56 : vector<8x32xf32> to vector<1x8x32xf32>
      tpu.vector_store %arg7[%c0_37, %c0_38, %c0_39], %59 {strides = array<i32>} : memref<1x8x32xf32, #tpu.memory_space<vmem>>, vector<1x8x32xf32>,
    } else {
    }
    return
  }
  func.func @transform_0(%arg0: i32, %arg1: i32) -> (i32, i32, i32) {
    %c0_i32 = arith.constant 0 : i32
    %c0_i32_0 = arith.constant 0 : i32
    %c0_i32_1 = arith.constant 0 : i32
    return %c0_i32, %arg1, %c0_i32_0 : i32, i32, i32
  }
  func.func @transform_1(%arg0: i32, %arg1: i32) -> (i32, i32, i32) {
    %c0_i32 = arith.constant 0 : i32
    %c0_i32_0 = arith.constant 0 : i32
    %c0_i32_1 = arith.constant 0 : i32
    return %c0_i32, %arg1, %c0_i32_0 : i32, i32, i32
  }
  func.func @transform_2(%arg0: i32, %arg1: i32) -> (i32, i32, i32) {
    %c0_i32 = arith.constant 0 : i32
    %c0_i32_0 = arith.constant 0 : i32
    %c0_i32_1 = arith.constant 0 : i32
    return %arg0, %c0_i32, %c0_i32_0 : i32, i32, i32
  }
  func.func @transform_3(%arg0: i32, %arg1: i32) -> (i32, i32, i32) {
    %c0_i32 = arith.constant 0 : i32
    %c0_i32_0 = arith.constant 0 : i32
    %c0_i32_1 = arith.constant 0 : i32
    %c0_i32_2 = arith.constant 0 : i32
    return %c0_i32, %c0_i32_0, %c0_i32_1 : i32, i32, i32
  }
  func.func @transform_4(%arg0: i32, %arg1: i32) -> (i32, i32) {
    %c0_i32 = arith.constant 0 : i32
    %c0_i32_0 = arith.constant 0 : i32
    %c0_i32_1 = arith.constant 0 : i32
    return %c0_i32, %c0_i32_0 : i32, i32
  }
  func.func @transform_5(%arg0: i32, %arg1: i32) -> (i32, i32, i32) {
    %c0_i32 = arith.constant 0 : i32
    %c0_i32_0 = arith.constant 0 : i32
    %c0_i32_1 = arith.constant 0 : i32
    return %arg0, %c0_i32, %c0_i32_0 : i32, i32, i32
  }
}

</mosaic_0001>

<bundles_post_ra>
// kernel: tpu_custom_call.1
= control target key start
LH: loop header
LB: loop body
LE: loop exit
PB: predicated region body
PF: predicated region fallthrough
CT: control target
= control target key end

     0   :  { %s2189_s0 = inlined_call_operand.hbm [shape: bf16[8,24,32], index: 0, kind: input, shape index: {}]   ;;  %s2190_s1 = inlined_call_operand.hbm [shape: f32[8,24,32], index: 1, kind: input, shape index: {}]   ;;  %s2191_s2 = inlined_call_operand.hbm [shape: f32[4,8,32], index: 2, kind: input, shape index: {}]   ;;  %s2192_s3 = inlined_call_operand.vmem [shape: f32[1,1,32], index: 3, kind: input, shape index: {}]   ;;  %s2193_s4 = inlined_call_operand.vmem [shape: s32[8,1], index: 4, kind: input, shape index: {}]   ;;  %s2194_s5 = inlined_call_operand.hbm [shape: f32[4,8,32], index: 5, kind: output, shape index: {}]  }
   0x1   :  { %2205 = sst [smem:[#allocation20_spill]] %s2189_s0 }
   0x2   :  { %2206 = sst [smem:[#allocation21_spill]] %s2190_s1 }
   0x3   :  { %2207 = sst [smem:[#allocation22_spill]] %s2194_s5 }
   0x4   :  { %10 = vsyncpa [#allocation6], 0 }
   0x5   :  { %12 = vsyncpa [#allocation6 + $0x1], 0 }
   0x6   :  { %13 = vsyncpa [#allocation9], 0 }
   0x7   :  { %15 = vsyncpa [#allocation9 + $0x1], 0 }
   0x8   :  { %16 = vsyncpa [#allocation7], 0 }
   0x9   :  { %18 = vsyncpa [#allocation7 + $0x1], 0  ;;  %s1726_s18 = smov 0   ;;  %s1728_s19 = smov 0  }
   0xa   :  { %s1730_s20 = smov 0   ;;  %s1732_s21 = smov 0  }
   0xb   :  { %s1734_s22 = smov 0   ;;  %s1736_s23 = smov 0  }
   0xc   :  { %s1738_s24 = smov 0   ;;  %s1740_s25 = smov 0  }
   0xd   :  { %s1742_s26 = smov 0   ;;  %s1744_s27 = smov 0  }
   0xe   :  { %s1746_s28 = smov 0  }
   0xf LB: > { %2208 = sst [smem:[#allocation16_spill]] %s1669_s26  ;;  %p50_p0 = scmp.ne.s32.totalorder %s1657_s23, %s1653_s22  ;;  %s1677_s28 = sphi %s1746_s28, %s24_s28   ;;  %s1673_s27 = sphi %s1744_s27, %s2234_s27   ;;  %s1669_s26 = sphi %s1742_s26, %s2233_s26   ;;  %s1665_s25 = sphi %s1740_s25, %s2232_s25   ;;  %s1661_s24 = sphi %s1738_s24, %s2231_s24   ;;  %s1657_s23 = sphi %s1736_s23, %s2240_s23   ;;  %s1653_s22 = sphi %s1734_s22, %s2239_s22   ;;  %s1649_s21 = sphi %s1732_s21, %s2238_s21   ;;  %s1645_s20 = sphi %s1730_s20, %s2237_s20   ;;  %s1641_s19 = sphi %s1728_s19, %s2236_s19   ;;  %s1637_s18 = sphi %s1726_s18, %s2235_s18  }
  0x10   : > { %2209 = sst [smem:[#allocation17_spill]] %s1673_s27  ;;  %p2197_p1 = scmp.eq.s32.totalorder %s1677_s28, 0 }
  0x11   : > { %p2195_p2 = scmp.lt.s32.totalorder %s1677_s28, 12  ;;  %s1787_s30 = sand.u32 1, %s1657_s23  }
  0x12   : > { %p52_p3 = por %p2197_p1, %p50_p0  ;;  %s226_s6 = sand.u32 1, %s1677_s28  }
  0x13   : > { %s1217_s7 = sshll.u32 %s1787_s30, 6  ;;  %s1218_s9 = sshll.u32 %s1669_s26, 7 }
  0x14   : > { %p1795_p4 = pnand %p2195_p2, %p52_p3  ;;  %s230_s10 = scalar_lea.vmem [#allocation8], %s1217_s7 }
  0x15   : > { %s236_s11 = sshll.u32 %s230_s10, 4  ;;  %s2211_s1 = sld [smem:[#allocation21_spill]]  ;;  %s1805_s11 = int_to_ptr.vmem [resolvable:$true] %s236_s11 }
  0x16   : > { %s1807_s15 = scalar_lea.sflag [#allocation9], %s226_s6  ;;  %p1459_p6 = pneg %p1795_p4 }
  0x1b   : > { %s1803_s14 = scalar_lea.hbm %s2211_s1, %s1218_s9  ;;  %s1462_s9 = scalar_lea.hbm %s2211_s1, 3072 }
  0x1c   : > { %s1457_s16 = scalar_lea.hbm %s1803_s14, 1024  ;;  %p1463_p9 = scmp.lt.u32.totalorder %s1803_s14, %s2211_s1 }
  0x1d   : > { %p1458_p5 = scmp.ne.s32.totalorder %s1803_s14, %s1457_s16  ;;  %p1464_p10 = scmp.lt.u32.totalorder %s1462_s9, %s1457_s16 }
  0x1e   : > { %p1466_p12 = scmp.lt.u32.totalorder %s1457_s16, %s1803_s14 }
  0x1f   : > { %p1460_p7 = pnand %p1459_p6, %p1458_p5  ;;  %p1465_p11 = por %p1464_p10, %p1463_p9 }
  0x21   : > { %p1461_p8 = pneg %p1460_p7  ;;  %p1467_p13 = por %p1466_p12, %p1465_p11 }
  0x23   : > { %p1468_p0 = pnand %p1467_p13, %p1461_p8 }
  0x25   : > { %1471 = shalt.err (!%p1468_p0)
}
  0x26   : > { %s1472_s6 = scalar_lea.vmem %s1805_s11, 1024  ;;  %s1679_s13 = smov [#allocation8]  }
  0x27   : > { %p1473_p3 = scmp.ne.s32.totalorder %s1805_s11, %s1472_s6  ;;  %s1477_s17 = sshll.u32 %s1679_s13, 4  ;;  %s1478_s17 = int_to_ptr.vmem [resolvable:$false] %s1477_s17 }
  0x28   : > { %s1479_s7 = scalar_lea.vmem %s1478_s17, 2048  ;;  %p1480_p2 = scmp.lt.s32.totalorder %s1805_s11, %s1478_s17 }
  0x29   : > { %p1475_p5 = pnand %p1473_p3, %p1459_p6  ;;  %p1481_p9 = scmp.lt.s32.totalorder %s1479_s7, %s1472_s6 }
  0x2b   : > { %p1476_p7 = pneg %p1475_p5  ;;  %p1482_p10 = por %p1481_p9, %p1480_p2 }
  0x2d   : > { %p1483_p11 = pnand %p1482_p10, %p1476_p7 }
  0x2f   : > { %1486 = shalt.err (!%p1483_p11)
}
  0x30   : > { %s1680_s16 = smov 384   ;;  %s1681_s9 = smov 128  }
  0x31   : > { %s1682_s10 = smov 8   ;;  %p1221_p8 = scmp.ge.s32.totalorder %s1677_s28, 1 }
  0x32   : > { %1320 = dma.hbm_to_vmem [thread:$0]  (!%p1795_p4), %s1803_s14, 1024, %s1805_s11, %s1807_s15, %s1680_s16, %s1681_s9, %s1682_s10  }
  0x33   : > { %p262_p12 = scmp.lt.s32.totalorder %s1677_s28, 13  ;;  %s1215_s6 = sshll.u32 %s1787_s30, 5 }
  0x34   : > { %s1216_s13 = sshll.u32 %s1669_s26, 6  ;;  %s2213_s0 = sld [smem:[#allocation20_spill]] }
  0x35   : > { %p1837_p2 = pnand %p1221_p8, %p262_p12  ;;  %s210_s1 = scalar_lea.vmem [#allocation5], %s1215_s6 }
  0x36   : > { %s216_s5 = sshll.u32 %s210_s1, 4  ;;  %s207_s11 = scalar_lea.sflag [#allocation6], %s1787_s30  ;;  %s1848_s5 = int_to_ptr.vmem [resolvable:$true] %s216_s5 }
  0x37   : > { %s2212_s12 = scalar_select %p1837_p2, 1, 0 }
  0x3a   : > { %s1846_s29 = scalar_lea.hbm %s2213_s0, %s1216_s13  ;;  %s1492_s10 = scalar_lea.hbm %s2213_s0, 1536 }
  0x3b   : > { %s1487_s14 = scalar_lea.hbm %s1846_s29, 512  ;;  %p1493_p5 = scmp.lt.u32.totalorder %s1846_s29, %s2213_s0 }
  0x3c   : > { %p1488_p13 = scmp.ne.s32.totalorder %s1846_s29, %s1487_s14  ;;  %p1494_p7 = scmp.lt.u32.totalorder %s1492_s10, %s1487_s14 }
  0x3d   : > { %p1496_p10 = scmp.lt.u32.totalorder %s1487_s14, %s1846_s29 }
  0x3e   : > { %p1490_p0 = pnand %p1488_p13, %p1459_p6  ;;  %p1495_p9 = por %p1494_p7, %p1493_p5 }
  0x40   : > { %p1491_p3 = pneg %p1490_p0  ;;  %p1497_p11 = por %p1496_p10, %p1495_p9 }
  0x42   : > { %p1498_p8 = pnand %p1497_p11, %p1491_p3 }
  0x44   : > { %1501 = shalt.err (!%p1498_p8)
}
  0x45   : > { %s1502_s1 = scalar_lea.vmem %s1848_s5, 512  ;;  %s1683_s6 = smov [#allocation5]  }
  0x46   : > { %p1503_p12 = scmp.ne.s32.totalorder %s1848_s5, %s1502_s1  ;;  %s1507_s7 = sshll.u32 %s1683_s6, 4  ;;  %s1508_s7 = int_to_ptr.vmem [resolvable:$false] %s1507_s7 }
  0x47   : > { %s1509_s16 = scalar_lea.vmem %s1508_s7, 1024  ;;  %p1510_p1 = scmp.lt.s32.totalorder %s1848_s5, %s1508_s7 }
  0x48   : > { %p1505_p13 = pnand %p1503_p12, %p1459_p6  ;;  %p1511_p5 = scmp.lt.s32.totalorder %s1509_s16, %s1502_s1 }
  0x4a   : > { %p1506_p0 = pneg %p1505_p13  ;;  %p1512_p7 = por %p1511_p5, %p1510_p1 }
  0x4c   : > { %p1513_p9 = pnand %p1512_p7, %p1506_p0 }
  0x4e   : > { %1516 = shalt.err (!%p1513_p9)
}
  0x4f   : > { %s1684_s14 = smov 192   ;;  %s1685_s9 = smov 64  }
  0x50   : > { %s1686_s10 = smov 4   ;;  %s1877_s13 = sadd.s32 4294967295, %s1677_s28  }
  0x51   : > { %1317 = dma.hbm_to_vmem [thread:$0]  (!%p1795_p4), %s1846_s29, 512, %s1848_s5, %s207_s11, %s1684_s14, %s1685_s9, %s1686_s10  }
  0x52   : > { %s1212_s17 = sadd.s32 4294967294, %s1677_s28   ;;  %s33_s1 = sadd.s32 1, %s1669_s26 }
  0x53   : > { %p34_p1 = scmp.ge.s32.totalorder %s33_s1, 3  ;;  %s36_s6 = sadd.s32 1, %s1673_s27 }
  0x54   : > { %p56_p6 = scmp.ne.s32.totalorder %s1653_s22, %s1649_s21  ;;  %p57_p3 = scmp.eq.s32.totalorder %s1877_s13, 0 }
  0x55   : > { %s2242_s1 = smov (%p34_p1, %s33_s1), 0  ;;  %s2244_s6 = smov (!%p34_p1, %s36_s6), %s1673_s27 }
  0x56   : > { %2214 = sst [smem:[#allocation18_spill]] %s2242_s1  ;;  %s40_s5 = ssub.s32 %s1669_s26, %s2242_s1 }
  0x57   : > { %p1892_p4 = por %p57_p3, %p56_p6  ;;  %p38_p10 = scmp.ge.s32.totalorder %s2244_s6, 4 }
  0x58   : > { %p41_p11 = scmp.eq.s32.totalorder %s40_s5, 0  ;;  %s95_s30 = sadd.s32 1, %s1645_s20 }
  0x59   : > { %s2215_s29 = scalar_select %p1892_p4, 1, 0 }
  0x5a   : > { %p102_p8 = scmp.ne.s32.totalorder %s1645_s20, %s1641_s19  ;;  %s2246_s6 = smov (%p38_p10, %s2244_s6), 0 }
  0x5b   : > { %2216 = sst [smem:[#allocation19_spill]] %s2246_s6  ;;  %s2217_s21 = sadd.s32 1, %s1657_s23 }
  0x5c   : > { %s1904_s8 = scalar_select %p41_p11, %s1657_s23, %s2217_s21  }
  0x5d   : > { %s92_s11 = ssub.s32 %s1673_s27, %s2246_s6  ;;  %p2218_p12 = scmp.eq.s32.totalorder %s1677_s28, 0 }
  0x5e   : > { %p93_p0 = scmp.eq.s32.totalorder %s92_s11, 0  ;;  %p108_p5 = scmp.ne.s32.totalorder %s1641_s19, %s1637_s18 }
  0x5f   : > { %p1910_p13 = por %p102_p8, %p2218_p12  ;;  %p174_p7 = scmp.eq.s32.totalorder %s1877_s13, 11 }
  0x60   : > { %p180_p9 = scmp.eq.s32.totalorder %s1212_s17, 11  ;;  %p1922_p1 = por %p108_p5, %p57_p3 }
  0x61   : > { %s1918_s16 = scalar_select %p93_p0, %s1645_s20, %s95_s30  }
  0x62   : > { %s2220_s14 = scalar_select %p1922_p1, 1, 0 }
  0x63   : > { %p1926_p6 = por %p174_p7, %p102_p8  ;;  %p1930_p10 = por %p180_p9, %p108_p5 }
  0x64   : > { %s248_s5 = sand.u32 1, %s1645_s20   ;;  %s1220_s11 = sshll.u32 %s1673_s27, 7 }
  0x65   : > { %s2221_s9 = scalar_select %p1926_p6, 1, 0 }
  0x66   : > { %s2222_s10 = scalar_select %p1930_p10, 1, 0 }
  0x67   : > { %s1219_s21 = sshll.u32 %s248_s5, 3  ;;  %s1939_s30 = scalar_lea.hbm %s2191_s2, %s1220_s11 }
  0x68   : > { %s250_s6 = scalar_lea.vmem [#allocation10], %s1219_s21  ;;  %p2223_p3 = scmp.lt.s32.totalorder %s1677_s28, 12 }
  0x69   : > { %s257_s1 = sshll.u32 %s250_s6, 4  ;;  %s1517_s5 = scalar_lea.hbm %s1939_s30, 128  ;;  %s258_s1 = int_to_ptr.vmem [resolvable:$true] %s257_s1 }
  0x6a   : > { %p1945_p11 = pnand %p2223_p3, %p1910_p13  ;;  %p1518_p8 = scmp.ne.s32.totalorder %s1939_s30, %s1517_s5 }
  0x6b   : > { %s1522_s6 = scalar_lea.hbm %s2191_s2, 512  ;;  %p1523_p13 = scmp.lt.u32.totalorder %s1939_s30, %s2191_s2 }
  0x6c   : > { %p1519_p12 = pneg %p1945_p11  ;;  %p1524_p7 = scmp.lt.u32.totalorder %s1522_s6, %s1517_s5 }
  0x6d   : > { %p1526_p3 = scmp.lt.u32.totalorder %s1517_s5, %s1939_s30 }
  0x6e   : > { %p1520_p0 = pnand %p1519_p12, %p1518_p8  ;;  %p1525_p9 = por %p1524_p7, %p1523_p13 }
  0x70   : > { %p1521_p5 = pneg %p1520_p0  ;;  %p1527_p10 = por %p1526_p3, %p1525_p9 }
  0x72   : > { %p1528_p6 = pnand %p1527_p10, %p1521_p5 }
  0x74   : > { %1531 = shalt.err (!%p1528_p6)
}
  0x75   : > { %s1532_s17 = scalar_lea.vmem %s258_s1, 128  ;;  %s1687_s27 = smov [#allocation10]  }
  0x76   : > { %p1533_p1 = scmp.ne.s32.totalorder %s258_s1, %s1532_s17  ;;  %s1537_s0 = sshll.u32 %s1687_s27, 4  ;;  %s1538_s0 = int_to_ptr.vmem [resolvable:$false] %s1537_s0 }
  0x77   : > { %s1539_s21 = scalar_lea.vmem %s1538_s0, 256  ;;  %p1540_p4 = scmp.lt.s32.totalorder %s258_s1, %s1538_s0 }
  0x78   : > { %p1535_p8 = pnand %p1533_p1, %p1519_p12  ;;  %p1541_p2 = scmp.lt.s32.totalorder %s1539_s21, %s1532_s17 }
  0x7a   : > { %p1536_p0 = pneg %p1535_p8  ;;  %p1542_p7 = por %p1541_p2, %p1540_p4 }
  0x7c   : > { %p1543_p13 = pnand %p1542_p7, %p1536_p0 }
  0x7e   : > { %1546 = shalt.err (!%p1543_p13)
}
  0x7f   : > { %1323 = dma.hbm_to_vmem [thread:$0]  (!%p1945_p11), %s1939_s30, 128, %s258_s1, %s1807_s15  }
  0x80   : > { %p2225_p6 = scmp.ne.s32.totalorder %s2212_s12, 0 }
  0x81   : > { %s268_s5 = sand.u32 (!%p2225_p6), 1, %s1653_s22   ;;  %p2226_p1 = scmp.ne.s32.totalorder (!%p2225_p6), %s2215_s29, 0 }
  0x82   : > { %266 = sbr.rel (%p2225_p6) target bundleno = 956 (0x3bc), region = 40  ;;  %s1222_s6 = sshll.u32 (!%p2225_p6), %s268_s5, 5 }
  0x83   : > { %s269_s27 = scalar_lea.sflag (!%p2225_p6), [#allocation6], %s268_s5  ;;  %s1974_s7 = scalar_lea.vmem (!%p2225_p6), [#allocation5], %s1222_s6 }
  0x89   : > { %1620 = dma.done.wait (%p2226_p1), %s269_s27, 512  }
  0x8a   : > { %1622 = vsyncadd (%p2226_p1), %s269_s27, 4294966784  ;;  %s277_s26 = sand.u32 1, %s1877_s13   ;;  %s1223_s11 = sshll.u32 %s268_s5, 6 }
  0x8b   : > { %s278_s15 = scalar_lea.sflag [#allocation9], %s277_s26  ;;  %s1981_s1 = scalar_lea.vmem [#allocation8], %s1223_s11 }
  0x8c   : > { %1624 = dma.done.wait (%p2226_p1), %s278_s15, 1024  }
  0x8d   : > { %1626 = vsyncadd (%p2226_p1), %s278_s15, 4294966272  ;;  %s288_s12 = sand.u32 1, %s1641_s19   ;;  %p2227_p2 = scmp.ne.s32.totalorder %s2220_s14, 0 }
  0x8e   : > { %s1990_s30 = sshll.u32 %s288_s12, 3 }
  0x8f   : > { %s290_s17 = scalar_lea.vmem [#allocation10], %s1990_s30 }
  0x90   : > { %1628 = dma.done.wait (%p2227_p2), %s278_s15, 128  }
  0x91   : > { %1630 = vsyncadd (%p2227_p2), %s278_s15, 4294967168  ;;  %s326_s13 = scalar_lea.vmem [#allocation11], %s1990_s30  ;;  %p1226_p4 = scmp.ne.s32.totalorder %s1661_s24, 0 }
  0x92   : > { %vm332_vm0 = vcmask (!%p1226_p4), 7168   ;;  %vm335_vm1 = vcmask (!%p1226_p4), 261120   ;;  %v1688_v0 = vmov (!%p1226_p4), -1e+30   ;;  %v1689_v1 = vmov (!%p1226_p4), 0.0  }
  0x93   : > { %331 = sbr.rel (%p1226_p4) target bundleno = 154 (0x9a), region = 56  ;;  %333 = vst.msk [vmem:[#allocation2] sm:$0xff] (!%p1226_p4), %vm332_vm0, %v1688_v0  ;;  %334 = vst.msk [vmem:[#allocation3] sm:$0xff] (!%p1226_p4), %vm332_vm0, %v1689_v1 }
  0x94   : > { %336 = vst.msk [vmem:[#allocation4] sm:$0xff] (!%p1226_p4), %vm335_vm1, %v1689_v1 }
  0x9a PF: > { %v351_v2 = vlaneseq  ;;  %v1690_v3 = vmov 1966171168   ;;  %v345_v5 = vld [vmem:[%s290_s17] sm:$0xff]  ;;  %v1691_v7 = vmov 0   ;;  %v339_v26 = vld [vmem:[%s1981_s1 + $0x10] sm:$0xff]  ;;  %v340_v42 = vld [vmem:[%s1981_s1 + $0x18] sm:$0xff] }
  0x9b   : > { %v349_v4 = vunpack.c.l.s4 %v1690_v3  ;;  %1431 = vset.pattern.permute.xlu0 %v1691_v7  ;;  %1432 = vset.pattern.permute.xlu1 %v1691_v7  ;;  %v347_v9 = vcombine.high %v345_v5, %v345_v5  ;;  %v337_v20 = vld [vmem:[%s1981_s1] sm:$0xff]  ;;  %v342_v27 = vld [vmem:[%s1981_s1 + $0x28] sm:$0xff]  ;;  %v343_v37 = vld [vmem:[%s1981_s1 + $0x30] sm:$0xff]  ;;  %vm467_vm2 = vcmask 261120   ;;  %vm542_vm3 = vcmask 1041409   ;;  %s1228_s5 = sshll.u32 %s1661_s24, 3 }
  0x9c   : > { %v352_v6 = vshrl.u32 %v351_v2, 7  ;;  %v1999_v8 = vand.u32 127, %v351_v2  ;;  %v341_v21 = vld [vmem:[%s1981_s1 + $0x20] sm:$0xff]  ;;  %v338_v34 = vld [vmem:[%s1981_s1 + $0x8] sm:$0xff]  ;;  %v344_v45 = vld [vmem:[%s1981_s1 + $0x38] sm:$0xff]  ;;  %vm544_vm4 = vcmask 1042434  }
  0x9d   : > { %v350_v10 = vunpack.c.0.s8 %v349_v4  ;;  %v1227_v50 = vld [vmem:[%s2192_s3] ss:$0 sm:$0xff]  ;;  %vm546_vm5 = vcmask 1043459   ;;  %vm548_vm6 = vcmask 1044484   ;;  %vm550_vm7 = vcmask 1045509   ;;  %p1237_p10 = scmp.ne.s32.totalorder %s1661_s24, 2 }
  0x9e   : > { %v2002_v11 = vsub.s32 %v1999_v8, %v352_v6  ;;  %v398_v14 = vsub.s32 0, %v352_v6  ;;  %vm552_vm8 = vcmask 1046534   ;;  %vm554_vm9 = vcmask 1047559  }
  0x9f   : > { %v2004_v12 = vsub.s32 %v350_v10, %v352_v6  ;;  %vm559_vm10 = vcmask 64512   ;;  %vm581_vm12 = vcmask 7168   ;;  %vm660_vm13 = vcmask 1043456  }
  0xa0   : > { %vm1693_vm14 = vmmov 0  }
  0xa1   : > { %v354_v13 = vrot.slane %v345_v5, %v2004_v12  ;;  %v361_v15 = vrot.slane %v347_v9, %v2004_v12 }
  0xa3   : > { %v370_v16 = vrot.slane %v354_v13, %v2004_v12  ;;  %v377_v17 = vrot.slane %v361_v15, %v2004_v12  ;;  %v363_v18 = vcombine.high %v361_v15, %v361_v15  ;;  %v362_v19 = vcombine.high %v354_v13, %v354_v13 }
  0xa5   : > { %v399_v22 = vrot.slane %v370_v16, %v398_v14  ;;  %v392_v23 = vcombine.high %v370_v16, %v370_v16  ;;  %v415_v24 = vrot.slane %v377_v17, %v398_v14  ;;  %v391_v25 = vrot.slane %v363_v18, %v2004_v12 }
  0xa6   : > { %v384_v28 = vrot.slane %v362_v19, %v2004_v12  ;;  %v393_v29 = vcombine.high %v377_v17, %v377_v17 }
  0xa7   : > { %v436_v30 = vadd.f32 %v399_v22, %v337_v20  ;;  %v407_v31 = vrot.slane %v392_v23, %v398_v14  ;;  %v440_v32 = vadd.f32 %v415_v24, %v341_v21  ;;  %v419_v33 = vrot.slane %v391_v25, %v398_v14 }
  0xa8   : > { %v403_v35 = vrot.slane %v384_v28, %v398_v14  ;;  %v394_v36 = vcombine.high %v384_v28, %v384_v28  ;;  %v423_v38 = vrot.slane %v393_v29, %v398_v14  ;;  %v395_v39 = vcombine.high %v391_v25, %v391_v25 }
  0xa9   : > { %1434 = vtanh.f32 %v436_v30  ;;  %v438_v40 = vadd.f32 %v407_v31, %v339_v26  ;;  %v441_v41 = vadd.f32 %v419_v33, %v342_v27 }
  0xaa   : > { %1436 = vtanh.f32 %v440_v32  ;;  %v437_v43 = vadd.f32 %v403_v35, %v338_v34  ;;  %v411_v44 = vrot.slane %v394_v36, %v398_v14  ;;  %v442_v46 = vadd.f32 %v423_v38, %v343_v37 }
  0xab   : > { %1438 = vtanh.f32 %v438_v40  ;;  %v427_v47 = vrot.slane %v395_v39, %v398_v14  ;;  %v497_v14 = vld [vmem:[%s2193_s4] sm:$0xff]  ;;  %v495_v34 = vstv %s1228_s5 }
  0xac   : > { %1440 = vtanh.f32 %v441_v41  ;;  %v439_v48 = vadd.f32 %v411_v44, %v340_v42  ;;  %v496_v37 = vadd.s32 %v495_v34, %v1999_v8 }
  0xad   : > { %1442 = vtanh.f32 %v437_v43  ;;  %v443_v49 = vadd.f32 %v427_v47, %v344_v45  ;;  %v558_v43 = vld [vmem:[#allocation2] sm:$0xff]  ;;  %v649_v47 = vld [vmem:[%s1974_s7] sm:$0xf] }
  0xae   : > { %1444 = vtanh.f32 %v439_v48  ;;  %v650_v48 = vld [vmem:[%s1974_s7 + $0x4] sm:$0xf] }
  0xaf   : > { %1446 = vtanh.f32 %v442_v46 }
  0xb0   : > { %1448 = vtanh.f32 %v443_v49  ;;  %v1692_v49 = vmov 0.0  }
  0xb1   : > { %1258 = vmatprep.subr.bf16.mxu0 %v1692_v49  ;;  %1264 = vmatprep.subr.bf16.mxu1 %v1692_v49 }
  0xb2   : > { %1260 = vmatprep.mubr.msk.bf16.mxu0 %vm1693_vm14, %v1692_v49  ;;  %1266 = vmatprep.mubr.msk.bf16.mxu1 %vm1693_vm14, %v1692_v49 }
  0xb3   : > { %v1435_v51 = vpop.eup %1434 }
  0xb4   : > { %v1437_v52 = vpop.eup %1436  ;;  %v459_v53 = vmul.f32 %v1435_v51, %v1227_v50  ;;  %v708_v51 = vsel %vm660_vm13, %v650_v48, 0 }
  0xb5   : > { %v1439_v54 = vpop.eup %1438  ;;  %v463_v55 = vmul.f32 %v1437_v52, %v1227_v50  ;;  %1265 = vmatpush3.bf16.msra.mxu1 %v708_v51 }
  0xb6   : > { %v1441_v56 = vpop.eup %1440  ;;  %v468_v57 = vsel %vm467_vm2, %v459_v53, 0.0  ;;  %v461_v58 = vmul.f32 %v1439_v54, %v1227_v50  ;;  %1276 = vmatprep.subr.bf16.mxu1 %v1692_v49 }
  0xb7   : > { %v1443_v59 = vpop.eup %1442  ;;  %469 = vadd.xlane.f32.xlu0 %v468_v57  ;;  %v464_v60 = vmul.f32 %v1441_v56, %v1227_v50  ;;  %v480_v63 = vsel %vm467_vm2, %v463_v55, 0.0 }
  0xb8   : > { %v1445_v61 = vpop.eup %1444  ;;  %v474_v62 = vsel %vm467_vm2, %v461_v58, 0.0  ;;  %v460_v0 = vmul.f32 %v1443_v59, %v1227_v50  ;;  %v651_v58 = vld [vmem:[%s1974_s7 + $0x8] sm:$0xf] }
  0xb9   : > { %v1447_v1 = vpop.eup %1446  ;;  %475 = vadd.xlane.f32.xlu1 %v474_v62  ;;  %v483_v2 = vsel %vm467_vm2, %v464_v60, 0.0  ;;  %v462_v3 = vmul.f32 %v1445_v61, %v1227_v50  ;;  %v652_v61 = vld [vmem:[%s1974_s7 + $0xc] sm:$0xf] }
  0xba   : > { %v1449_v4 = vpop.eup %1448  ;;  %v471_v5 = vsel %vm467_vm2, %v460_v0, 0.0  ;;  %v465_v6 = vmul.f32 %v1447_v1, %v1227_v50 }
  0xbb   : > { %481 = vadd.xlane.f32.xlu0 %v480_v63  ;;  %v477_v7 = vsel %vm467_vm2, %v462_v3, 0.0  ;;  %v466_v9 = vmul.f32 %v1449_v4, %v1227_v50  ;;  %v662_v50 = vsel %vm660_vm13, %v649_v47, 0  ;;  %v754_v63 = vsel %vm660_vm13, %v651_v58, 0 }
  0xbc   : > { %v486_v10 = vsel %vm467_vm2, %v465_v6, 0.0  ;;  %1259 = vmatpush3.bf16.msra.mxu0 %v662_v50 }
  0xbd   : > { %484 = vadd.xlane.f32.xlu1 %v483_v2  ;;  %v489_v13 = vsel %vm467_vm2, %v466_v9, 0.0  ;;  %1270 = vmatprep.subr.bf16.mxu0 %v1692_v49  ;;  %v800_v2 = vsel %vm660_vm13, %v652_v61, 0  ;;  %v654_v9 = vld [vmem:[%s1974_s7 + $0x14] sm:$0xf] }
  0xbf   : > { %472 = vadd.xlane.f32.xlu0 %v471_v5  ;;  %v653_v5 = vld [vmem:[%s1974_s7 + $0x10] sm:$0xf] }
  0xc1   : > { %478 = vadd.xlane.f32.xlu1 %v477_v7 }
  0xc3   : > { %487 = vadd.xlane.f32.xlu0 %v486_v10 }
  0xc5   : > { %490 = vadd.xlane.f32.xlu1 %v489_v13  ;;  %v846_v13 = vsel %vm660_vm13, %v653_v5, 0 }
  0xd9   : > { %499 = vperm.xlu0 %1431, %v497_v14  }
 0x144   : > { %v470_v15 = vpop.xlane.xlu0 %469 }
 0x145   : > { %v513_v20 = vrot.slane %v470_v15, %v2002_v11  ;;  %v892_v15 = vsel %vm660_vm13, %v654_v9, 0 }
 0x146   : > { %v476_v16 = vpop.xlane.xlu1 %475 }
 0x147   : > { %v521_v22 = vrot.slane %v476_v16, %v2002_v11 }
 0x148   : > { %v482_v17 = vpop.xlane.xlu0 %481 }
 0x149   : > { %v529_v26 = vrot.slane %v482_v17, %v2002_v11 }
 0x14a   : > { %v485_v18 = vpop.xlane.xlu1 %484 }
 0x14b   : > { %v533_v29 = vrot.slane %v485_v18, %v2002_v11  ;;  %v655_v18 = vld [vmem:[%s1974_s7 + $0x18] sm:$0xf] }
 0x14c   : > { %v473_v19 = vpop.xlane.xlu0 %472 }
 0x14d   : > { %v517_v21 = vrot.slane %v473_v19, %v2002_v11 }
 0x14e   : > { %v479_v23 = vpop.xlane.xlu1 %478 }
 0x14f   : > { %v543_v24 = vsel %vm542_vm3, %v517_v21, %v513_v20  ;;  %v525_v25 = vrot.slane %v479_v23, %v2002_v11  ;;  %v656_v20 = vld [vmem:[%s1974_s7 + $0x1c] sm:$0xf] }
 0x150   : > { %v545_v27 = vsel %vm544_vm4, %v521_v22, %v543_v24  ;;  %v488_v28 = vpop.xlane.xlu0 %487  ;;  %v938_v22 = vsel %vm660_vm13, %v655_v18, 0  ;;  %v984_v24 = vsel %vm660_vm13, %v656_v20, 0  ;;  %v1694_v20 = vmov (!%p1237_p10), 0  }
 0x151   : > { %v547_v30 = vsel %vm546_vm5, %v525_v25, %v545_v27  ;;  %v537_v32 = vrot.slane %v488_v28, %v2002_v11  ;;  %v575_v28 = vld [vmem:[#allocation3] sm:$0xff] }
 0x152   : > { %v549_v31 = vsel %vm548_vm6, %v529_v26, %v547_v30  ;;  %v491_v33 = vpop.xlane.xlu1 %490 }
 0x153   : > { %v551_v35 = vsel %vm550_vm7, %v533_v29, %v549_v31  ;;  %v541_v36 = vrot.slane %v491_v33, %v2002_v11 }
 0x154   : > { %v553_v38 = vsel %vm552_vm8, %v537_v32, %v551_v35 }
 0x155   : > { %v555_v40 = vsel %vm554_vm9, %v541_v36, %v553_v38 }
 0x158   : > { %v500_v39 = vpop.permute.xlu0 %499 }
 0x159   : > { %vm501_vm11 = vcmp.ge.s32.totalorder %v496_v37, %v500_v39 }
 0x15a   : > { %v557_v41 = vsel %vm501_vm11, -1e+30, %v555_v40 }
 0x15b   : > { %v560_v42 = vsel %vm559_vm10, %v557_v41, -inf }
 0x15c   : > { %561 = vmax.xlane.f32.xlu1 %v560_v42 }
 0x1e9   : > { %v562_v44 = vpop.xlane.xlu1 %561 }
 0x1ea   : > { %v563_v11 = vmax.f32 %v558_v43, %v562_v44 }
 0x1ec   : > { %v564_v45 = vsub.f32 %v558_v43, %v563_v11  ;;  %1058 = vst.msk [vmem:[#allocation2] sm:$0xff] %vm581_vm12, %v563_v11  ;;  %569 = vperm.xlu1 %1432, %v563_v11  }
 0x1ee   : > { %v565_v8 = vmul.f32 1.442695, %v564_v45 }
 0x1f0   : > { %1450 = vpow2.f32 %v565_v8 }
 0x1fa   : > { %v2053_v46 = vpop.eup %1450 }
 0x1fb   : > { %1029 = vperm.xlu0 %1431, %v2053_v46   ;;  %v576_v29 = vmul.f32 %v2053_v46, %v575_v28 }
 0x1ff   : > { %1454 = vset.pattern.permute.xlu0 (!%p1237_p10), %v1694_v20 }
 0x26b   : > { %v570_v52 = vpop.permute.xlu1 %569 }
 0x26c   : > { %v572_v53 = vsub.f32 %v557_v41, %v570_v52 }
 0x26e   : > { %v573_v54 = vmul.f32 1.442695, %v572_v53 }
 0x270   : > { %1452 = vpow2.f32 %v573_v54 }
 0x27a   : > { %v1453_v55 = vpop.eup %1452 }
 0x27b   : > { %v577_v56 = vsel %vm559_vm10, %v1453_v55, 0.0  ;;  %v591_v57 = vrot.slane %v1453_v55, %v2004_v12  ;;  %v584_v3 = vcombine.high %v1453_v55, %v1453_v55 }
 0x27c   : > { %578 = vadd.xlane.f32.xlu1 %v577_v56 }
 0x27d   : > { %v607_v59 = vrot.slane %v591_v57, %v2004_v12  ;;  %v599_v60 = vcombine.high %v591_v57, %v591_v57  ;;  %v598_v7 = vrot.slane %v584_v3, %v2004_v12 }
 0x27f   : > { %v641_v62 = vpack.c.bf16 %v607_v59, %v607_v59  ;;  %v621_v0 = vrot.slane %v599_v60, %v2004_v12  ;;  %v629_v4 = vcombine.high %v607_v59, %v607_v59  ;;  %v600_v16 = vcombine.high %v598_v7, %v598_v7 }
 0x280   : > { %v614_v17 = vrot.slane %v598_v7, %v2004_v12 }
 0x281   : > { %1261 = vmatmul.mubr.msk.bf16.vlgmr.msra.gmra.mrb[0].mxu0 %vm559_vm10, %v641_v62  ;;  %v642_v1 = vpack.c.bf16 %v621_v0, %v621_v0  ;;  %v631_v6 = vcombine.high %v621_v0, %v621_v0  ;;  %v643_v10 = vpack.c.bf16 %v629_v4, %v629_v4  ;;  %v628_v19 = vrot.slane %v600_v16, %v2004_v12 }
 0x282   : > { %1271 = vmatpush3.bf16.msra.mxu0 %v754_v63  ;;  %1272 = vmatprep.mubr.msk.bf16.mxu0 %vm1693_vm14, %v1692_v49  ;;  %v645_v21 = vpack.c.bf16 %v614_v17, %v614_v17  ;;  %v630_v25 = vcombine.high %v614_v17, %v614_v17 }
 0x283   : > { %1267 = vmatmul.mubr.msk.bf16.vlgmr.msra.gmra.mrb[0].mxu1 %vm559_vm10, %v642_v1  ;;  %1282 = vmatprep.subr.bf16.mxu0 %v1692_v49  ;;  %v644_v14 = vpack.c.bf16 %v631_v6, %v631_v6  ;;  %v646_v23 = vpack.c.bf16 %v628_v19, %v628_v19  ;;  %v632_v12 = vcombine.high %v628_v19, %v628_v19  ;;  %v1026_v1 = vld [vmem:[#allocation4] sm:$0xff] }
 0x284   : > { %1277 = vmatpush3.bf16.msra.mxu1 %v800_v2  ;;  %1278 = vmatprep.mubr.msk.bf16.mxu1 %vm1693_vm14, %v1692_v49  ;;  %v647_v26 = vpack.c.bf16 %v630_v25, %v630_v25  ;;  %v1030_v2 = vpop.permute.xlu0 %1029 }
 0x285   : > { %1288 = vmatprep.subr.bf16.mxu1 %v1692_v49  ;;  %v648_v27 = vpack.c.bf16 %v632_v12, %v632_v12 }
 0x289   : > { %1273 = vmatmul.mubr.msk.bf16.vlgmr.msra.gmra.mrb[4].mxu0 %vm559_vm10, %v643_v10 }
 0x28a   : > { %1283 = vmatpush3.bf16.msra.mxu0 %v846_v13  ;;  %1284 = vmatprep.mubr.msk.bf16.mxu0 %vm1693_vm14, %v1692_v49 }
 0x28b   : > { %1279 = vmatmul.mubr.msk.bf16.vlgmr.msra.gmra.mrb[4].mxu1 %vm559_vm10, %v644_v14  ;;  %1294 = vmatprep.subr.bf16.mxu0 %v1692_v49  ;;  %v1032_v14 = vmul.f32 %v1030_v2, %v1026_v1 }
 0x28c   : > { %1289 = vmatpush3.bf16.msra.mxu1 %v892_v15  ;;  %1290 = vmatprep.mubr.msk.bf16.mxu1 %vm1693_vm14, %v1692_v49 }
 0x28d   : > { %1300 = vmatprep.subr.bf16.mxu1 %v1692_v49 }
 0x291   : > { %1285 = vmatmul.mubr.msk.bf16.vlgmr.msra.gmra.mrb[8].mxu0 %vm559_vm10, %v645_v21 }
 0x292   : > { %1295 = vmatpush3.bf16.msra.mxu0 %v938_v22  ;;  %1296 = vmatprep.mubr.msk.bf16.mxu0 %vm1693_vm14, %v1692_v49 }
 0x293   : > { %1291 = vmatmul.mubr.msk.bf16.vlgmr.msra.gmra.mrb[8].mxu1 %vm559_vm10, %v646_v23 }
 0x294   : > { %1301 = vmatpush3.bf16.msra.mxu1 %v984_v24  ;;  %1302 = vmatprep.mubr.msk.bf16.mxu1 %vm1693_vm14, %v1692_v49 }
 0x299   : > { %1297 = vmatmul.mubr.msk.bf16.vlgmr.msra.gmra.mrb[12].mxu0 %vm559_vm10, %v647_v26 }
 0x29b   : > { %1303 = vmatmul.mubr.msk.bf16.vlgmr.msra.gmra.mrb[12].mxu1 %vm559_vm10, %v648_v27 }
 0x309   : > { %v579_v30 = vpop.xlane.xlu1 %578 }
 0x30a   : > { %v580_v31 = vadd.f32 %v579_v30, %v576_v29 }
 0x30c   : > { %582 = vst.msk [vmem:[#allocation3] sm:$0xff] %vm581_vm12, %v580_v31 }
 0x313   : > { %v1064_v19 = vld [vmem:[#allocation3] sm:$0xff] (!%p1237_p10) }
 0x314   : > { %1067 = vperm.xlu0 (!%p1237_p10), %1454, %v1064_v19  }
 0x354   : > { %v698_v32 = vpop.f32.mrb[0].mxu0 }
 0x355   : > { %v1262_v33 = vpop.f32.mrb[1].mxu0 }
 0x356   : > { %v701_v34 = vpop.f32.mrb[2].mxu0  ;;  %v744_v35 = vpop.f32.mrb[0].mxu1 }
 0x357   : > { %v1041_v36 = vrot.slane %v744_v35, 7  ;;  %v1263_v37 = vpop.f32.mrb[3].mxu0  ;;  %v1268_v38 = vpop.f32.mrb[1].mxu1 }
 0x358   : > { %v747_v39 = vpop.f32.mrb[2].mxu1 }
 0x359   : > { %v1042_v40 = vsel %vm542_vm3, %v1041_v36, %v698_v32  ;;  %v1269_v41 = vpop.f32.mrb[3].mxu1 }
 0x35c   : > { %v790_v42 = vpop.f32.mrb[4].mxu0 }
 0x35d   : > { %v1043_v43 = vrot.slane %v790_v42, 6  ;;  %v1274_v44 = vpop.f32.mrb[5].mxu0 }
 0x35e   : > { %v793_v11 = vpop.f32.mrb[6].mxu0  ;;  %v836_v45 = vpop.f32.mrb[4].mxu1 }
 0x35f   : > { %v1044_v8 = vsel %vm544_vm4, %v1043_v43, %v1042_v40  ;;  %v1045_v46 = vrot.slane %v836_v45, 5  ;;  %v1275_v47 = vpop.f32.mrb[7].mxu0  ;;  %v1280_v48 = vpop.f32.mrb[5].mxu1 }
 0x360   : > { %v839_v49 = vpop.f32.mrb[6].mxu1 }
 0x361   : > { %v1046_v50 = vsel %vm546_vm5, %v1045_v46, %v1044_v8  ;;  %v1281_v51 = vpop.f32.mrb[7].mxu1 }
 0x364   : > { %v882_v52 = vpop.f32.mrb[8].mxu0 }
 0x365   : > { %v1047_v53 = vrot.slane %v882_v52, 4  ;;  %v1286_v54 = vpop.f32.mrb[9].mxu0 }
 0x366   : > { %v885_v55 = vpop.f32.mrb[10].mxu0  ;;  %v928_v56 = vpop.f32.mrb[8].mxu1 }
 0x367   : > { %v1048_v57 = vsel %vm548_vm6, %v1047_v53, %v1046_v50  ;;  %v1049_v58 = vrot.slane %v928_v56, 3  ;;  %v1287_v59 = vpop.f32.mrb[11].mxu0  ;;  %v1292_v60 = vpop.f32.mrb[9].mxu1 }
 0x368   : > { %v931_v61 = vpop.f32.mrb[10].mxu1 }
 0x369   : > { %v1050_v62 = vsel %vm550_vm7, %v1049_v58, %v1048_v57  ;;  %v1293_v63 = vpop.f32.mrb[11].mxu1 }
 0x36c   : > { %v974_v0 = vpop.f32.mrb[12].mxu0 }
 0x36d   : > { %v1051_v3 = vrot.slane %v974_v0, 2  ;;  %v1298_v4 = vpop.f32.mrb[13].mxu0 }
 0x36e   : > { %v977_v5 = vpop.f32.mrb[14].mxu0  ;;  %v1020_v6 = vpop.f32.mrb[12].mxu1  ;;  %1062 = sbr.rel (%p1237_p10) target bundleno = 930 (0x3a2), region = 60 }
 0x36f   : > { %v1052_v7 = vsel %vm552_vm8, %v1051_v3, %v1050_v62  ;;  %v1053_v9 = vrot.slane %v1020_v6, 1  ;;  %v1299_v10 = vpop.f32.mrb[15].mxu0  ;;  %v1304_v13 = vpop.f32.mrb[13].mxu1 }
 0x370   : > { %v1023_v15 = vpop.f32.mrb[14].mxu1 }
 0x371   : > { %v1054_v16 = vsel %vm554_vm9, %v1053_v9, %v1052_v7  ;;  %v1305_v17 = vpop.f32.mrb[15].mxu1 }
 0x372   : > { %v1056_v18 = vadd.f32 %v1054_v16, %v1032_v14 }
 0x374   : > { %1057 = vst.msk [vmem:[#allocation4] sm:$0xff] %vm467_vm2, %v1056_v18 }
 0x37b   : > { %v1063_v22 = vld [vmem:[#allocation4] sm:$0xff] }
 0x393   : > { %v1068_v21 = vpop.permute.xlu0 %1067 }
 0x394   : > { %1455 = vrcp.f32 %v1068_v21 }
 0x39e   : > { %v1456_v23 = vpop.eup %1455 }
 0x39f   : > { %v1071_v24 = vmul.f32 %v1456_v23, %v1063_v22 }
 0x3a1   : > { %1072 = vst.msk [vmem:[%s326_s13] sm:$0xff] %vm467_vm2, %v1071_v24 }
 0x3a2 PF: > { %s1239_s24 = sshll.u32 %s1665_s25, 7  ;;  %s2228_s7 = sld [smem:[#allocation22_spill]] }
 0x3a3   : > { %s1087_s11 = sshll.u32 %s326_s13, 4  ;;  %s1074_s15 = scalar_lea.sflag [#allocation7], %s288_s12  ;;  %s1088_s11 = int_to_ptr.vmem [resolvable:$true] %s1087_s11 }
 0x3a4   : > { %s1547_s1 = scalar_lea.vmem %s1088_s11, 128  ;;  %p2229_p12 = scmp.ne.s32.totalorder %s2221_s9, 0 }
 0x3a5   : > { %p1548_p11 = scmp.ne.s32.totalorder %s1088_s11, %s1547_s1  ;;  %s1695_s17 = smov [#allocation11]  }
 0x3a6   : > { %s1551_s29 = sshll.u32 %s1695_s17, 4  ;;  %s1552_s29 = int_to_ptr.vmem [resolvable:$false] %s1551_s29 }
 0x3a7   : > { %p1549_p5 = pnand %p1548_p11, %p2229_p12  ;;  %s1553_s14 = scalar_lea.vmem %s1552_s29, 256 }
 0x3a8   : > { %s2129_s26 = scalar_lea.hbm %s2228_s7, %s1239_s24  ;;  %p1554_p3 = scmp.lt.s32.totalorder %s1088_s11, %s1552_s29 }
 0x3a9   : > { %p1550_p9 = pneg %p1549_p5  ;;  %p1555_p8 = scmp.lt.s32.totalorder %s1553_s14, %s1547_s1 }
 0x3ab   : > { %p1556_p0 = por %p1555_p8, %p1554_p3 }
 0x3ad   : > { %p1557_p7 = pnand %p1556_p0, %p1550_p9 }
 0x3af   : > { %1560 = shalt.err (!%p1557_p7)
}
 0x3b0   : > { %s1561_s25 = scalar_lea.hbm %s2129_s26, 128  ;;  %s1565_s13 = scalar_lea.hbm %s2228_s7, 512 }
 0x3b1   : > { %p1562_p13 = scmp.ne.s32.totalorder %s2129_s26, %s1561_s25  ;;  %p1566_p2 = scmp.lt.u32.totalorder %s2129_s26, %s2228_s7 }
 0x3b2   : > { %p1567_p4 = scmp.lt.u32.totalorder %s1565_s13, %s1561_s25  ;;  %p1569_p11 = scmp.lt.u32.totalorder %s1561_s25, %s2129_s26 }
 0x3b3   : > { %p1563_p6 = pnand %p1562_p13, %p2229_p12 }
 0x3b4   : > { %p1568_p10 = por %p1567_p4, %p1566_p2 }
 0x3b5   : > { %p1564_p1 = pneg %p1563_p6 }
 0x3b6   : > { %p1570_p5 = por %p1569_p11, %p1568_p10 }
 0x3b8   : > { %p1571_p9 = pnand %p1570_p5, %p1564_p1 }
 0x3ba   : > { %1574 = shalt.err (!%p1571_p9)
}
 0x3bb   : > { %1312 = dma.vmem_to_hbm [thread:$0]  (%p2229_p12), %s1088_s11, 128, %s2129_s26, %s1074_s15  }
 0x3bc PF: > { %p1329_p3 = scmp.ge.s32.totalorder %s1677_s28, 2  ;;  %s1099_s5 = sand.u32 1, %s1637_s18  }
 0x3bd   : > { %p2230_p8 = scmp.ne.s32.totalorder %s2222_s10, 0  ;;  %s1100_s24 = scalar_lea.sflag [#allocation7], %s1099_s5 }
 0x3bf   : > { %p1325_p0 = pnand %p1329_p3, %p2230_p8 }
 0x3c1   : > { %1632 = dma.done.wait (!%p1325_p0), %s1100_s24, 128  }
 0x3c2   : > { %1634 = vsyncadd (!%p1325_p0), %s1100_s24, 4294967168  ;;  %s24_s28 = sadd.s32 1, %s1677_s28   ;;  %s2231_s24 = sld [smem:[#allocation16_spill]] }
 0x3c3   : > { %p21_p7 = scmp.ge.s32.totalorder %s24_s28, 14   ;;  %s2232_s25 = sld [smem:[#allocation17_spill]] }
 0x3c4   : > { %s2233_s26 = sld [smem:[#allocation18_spill]]  ;;  %s2234_s27 = sld [smem:[#allocation19_spill]] }
 0x3c5   : > { %s2235_s18 = smov %s1641_s19  ;;  %s2236_s19 = smov %s1645_s20 }
 0x3c6   : > { %s2237_s20 = smov %s1918_s16  ;;  %s2238_s21 = smov %s1653_s22 }
 0x3c7   : > { %s2239_s22 = smov %s1657_s23  ;;  %s2240_s23 = smov %s1904_s8 }
 0x3c8   :  { %23 = sbr.rel (!%p21_p7) target bundleno = 15 (0xf), region = 117 }
 0x3cf   :  { %1105 = vsyncpa [#allocation6], 1 }
 0x3d0   :  { %1107 = vsyncpa [#allocation6 + $0x1], 1 }
 0x3d1   :  { %1108 = vsyncpa [#allocation9], 1 }
 0x3d2   :  { %1110 = vsyncpa [#allocation9 + $0x1], 1 }
 0x3d3   :  { %1111 = vsyncpa [#allocation7], 1 }
 0x3d4   :  { %1113 = vsyncpa [#allocation7 + $0x1], 1 }

</bundles_post_ra>
